<compile_context>
chip_gen: v7x
topology: tpu7x:2x2x1
jax: 0.10.0
libtpu: 0.0.40
codegen_flags: <defaults>
</compile_context>

<pallas_src>
import functools

import jax
import jax.numpy as jnp
from jax.experimental import pallas as pl
from jax.experimental.pallas import tpu as pltpu

_LANE = 128
# (2048,128) f32 block = 1 MiB; double-buffered x + int8 mask ~ 2.5 MiB VMEM,
# safely inside the default scoped VMEM on v5e/v6e/v7x.
_MAX_BLOCK_ROWS = 2048


def _round_up(x, m):
    return ((x + m - 1) // m) * m


def _keep_random(total, seed, shape, row0, threshold):
    """Bernoulli(p) keep-mask & validity mask via a stateless integer hash of
    the global element index (no pltpu PRNG -> works on TPU and interpret)."""
    rows_i = jax.lax.broadcasted_iota(jnp.int32, shape, 0)
    lane_i = jax.lax.broadcasted_iota(jnp.int32, shape, 1)
    gidx = (row0 + rows_i) * _LANE + lane_i
    valid = gidx < total

    h = gidx.astype(jnp.uint32)
    h = h ^ (seed.astype(jnp.uint32) * jnp.uint32(0x9E3779B9))
    # lowbias32 finalizer: decorrelates sequential indices.
    h = h ^ jax.lax.shift_right_logical(h, jnp.uint32(16))
    h = h * jnp.uint32(0x7FEB352D)
    h = h ^ jax.lax.shift_right_logical(h, jnp.uint32(15))
    h = h * jnp.uint32(0x846CA68B)
    h = h ^ jax.lax.shift_right_logical(h, jnp.uint32(16))
    return (h < jnp.uint32(threshold)) & valid


def _accumulate(keep, x_ref, acc_sum, acc_cnt):
    vals = jnp.where(keep, x_ref[...], jnp.float32(0.0))
    acc_sum[...] += jnp.sum(vals, axis=0, keepdims=True)
    acc_cnt[...] += jnp.sum(keep.astype(jnp.float32), axis=0, keepdims=True)


def _finalize(o_ref, acc_sum, acc_cnt, loss_factor):
    s = jnp.sum(acc_sum[...], axis=1, keepdims=True)  # (1,1)
    c = jnp.sum(acc_cnt[...], axis=1, keepdims=True)  # (1,1)
    # 0/0 -> NaN, matching torch.mean of an empty selection.
    o_ref[...] = (s / c) * jnp.float32(loss_factor)


def _mean_kernel_masked(scalars_ref, x_ref, m_ref, o_ref, acc_sum, acc_cnt,
                        *, threshold, loss_factor):
    i = pl.program_id(0)

    @pl.when(i == 0)
    def _():
        acc_sum[...] = jnp.zeros_like(acc_sum)
        acc_cnt[...] = jnp.zeros_like(acc_cnt)

    keep = _keep_random(scalars_ref[0], scalars_ref[1], x_ref.shape,
                        i * x_ref.shape[0], threshold)
    keep = keep & (m_ref[...] != 0)
    _accumulate(keep, x_ref, acc_sum, acc_cnt)

    @pl.when(i == pl.num_programs(0) - 1)
    def _():
        _finalize(o_ref, acc_sum, acc_cnt, loss_factor)


def _mean_kernel_nomask(scalars_ref, x_ref, o_ref, acc_sum, acc_cnt,
                        *, threshold, loss_factor):
    i = pl.program_id(0)

    @pl.when(i == 0)
    def _():
        acc_sum[...] = jnp.zeros_like(acc_sum)
        acc_cnt[...] = jnp.zeros_like(acc_cnt)

    keep = _keep_random(scalars_ref[0], scalars_ref[1], x_ref.shape,
                        i * x_ref.shape[0], threshold)
    _accumulate(keep, x_ref, acc_sum, acc_cnt)

    @pl.when(i == pl.num_programs(0) - 1)
    def _():
        _finalize(o_ref, acc_sum, acc_cnt, loss_factor)


def masked_sample_and_scale(x, mask=None, *, subsample_rate=0.1,
                            loss_factor=0.1, seed=0):
    """Pallas equivalent of RolloutAuxTask.masked_sample_and_scale."""
    x = jnp.asarray(x, jnp.float32)
    total = int(x.size)
    flat = x.reshape(-1)

    rem = total % _LANE
    if rem:
        # TODO(synk): a manual-DMA (pl.ANY) path could avoid this small tail
        # pad copy for non-128-multiple sizes; common feature shapes need none.
        flat = jnp.pad(flat, (0, _LANE - rem))
    rows = flat.shape[0] // _LANE
    x2 = flat.reshape(rows, _LANE)

    # Block rows: as large as useful, multiple of 32 (int8 mask tiling).
    block_rows = min(_MAX_BLOCK_ROWS, _round_up(rows, 32))
    grid = (pl.cdiv(rows, block_rows),)

    scalars = jnp.array([total, int(seed)], dtype=jnp.int32)
    threshold = min(int(round(float(subsample_rate) * 2.0 ** 32)), 0xFFFFFFFF)

    x_spec = pl.BlockSpec((block_rows, _LANE), lambda i, s: (i, 0))
    out_spec = pl.BlockSpec((1, 1), lambda i, s: (0, 0))
    scratch = [pltpu.VMEM((1, _LANE), jnp.float32),   # per-lane running sum
               pltpu.VMEM((1, _LANE), jnp.float32)]   # per-lane running count
    cparams = pltpu.CompilerParams(dimension_semantics=("arbitrary",))

    if mask is None:
        kernel = functools.partial(_mean_kernel_nomask,
                                   threshold=threshold,
                                   loss_factor=float(loss_factor))
        out = pl.pallas_call(
            kernel,
            out_shape=jax.ShapeDtypeStruct((1, 1), jnp.float32),
            grid_spec=pltpu.PrefetchScalarGridSpec(
                num_scalar_prefetch=1,
                grid=grid,
                in_specs=[x_spec],
                out_specs=out_spec,
                scratch_shapes=scratch),
            compiler_params=cparams,
        )(scalars, x2)
    else:
        mflat = jnp.asarray(mask).reshape(-1).astype(jnp.int8)
        if rem:
            mflat = jnp.pad(mflat, (0, _LANE - rem))
        m2 = mflat.reshape(rows, _LANE)
        m_spec = pl.BlockSpec((block_rows, _LANE), lambda i, s: (i, 0))
        kernel = functools.partial(_mean_kernel_masked,
                                   threshold=threshold,
                                   loss_factor=float(loss_factor))
        out = pl.pallas_call(
            kernel,
            out_shape=jax.ShapeDtypeStruct((1, 1), jnp.float32),
            grid_spec=pltpu.PrefetchScalarGridSpec(
                num_scalar_prefetch=1,
                grid=grid,
                in_specs=[x_spec, m_spec],
                out_specs=out_spec,
                scratch_shapes=scratch),
            compiler_params=cparams,
        )(scalars, x2, m2)

    return out[0, 0]


class RolloutAuxTaskPallas:
    """Mirror of the PyTorch base class (no learnable parameters).

    forward() / get_loss() are abstract in the reference; the concrete compute
    path (masked_sample_and_scale -> subsampled_mean) is the Pallas kernel.
    """

    def __init__(self, loss_factor=0.1, subsample_rate=0.1):
        self.loss_factor = loss_factor
        self.subsample_rate = subsample_rate

    def masked_sample_and_scale(self, x, mask=None, seed=0):
        return masked_sample_and_scale(
            x, mask,
            subsample_rate=self.subsample_rate,
            loss_factor=self.loss_factor,
            seed=seed,
        )
    # TODO(synk): get_loss/forward are abstract in the reference module; nothing to lower.


if __name__ == "__main__":
    key = jax.random.PRNGKey(0)
    kx, km = jax.random.split(key)

    # layout: NCHW, as a PyTorch conv/feature tensor would be; flattened inside.
    x = jax.random.normal(kx, (2, 4, 16, 16), jnp.float32)
    mask = jax.random.uniform(km, (2, 4, 16, 16)) < 0.5

    task = RolloutAuxTaskPallas(loss_factor=0.1, subsample_rate=0.1)

    loss_masked = task.masked_sample_and_scale(x, mask, seed=1234)
    loss_unmasked = task.masked_sample_and_scale(x, None, seed=1234)
    jax.block_until_ready((loss_masked, loss_unmasked))

    assert bool(jnp.isfinite(loss_masked)), "masked loss not finite"
    assert bool(jnp.isfinite(loss_unmasked)), "unmasked loss not finite"
    print("KERNEL_OK")
</pallas_src>

<mosaic_0001>
module attributes {stable_mosaic.version = 11 : i64} {
  func.func @_mean_kernel_masked(%arg0: i32, %arg1: memref<2xi32, #tpu.memory_space<smem>>, %arg2: memref<32x128xf32, #tpu.memory_space<vmem>>, %arg3: memref<32x128xi8, #tpu.memory_space<vmem>>, %arg4: memref<1x1xf32, #tpu.memory_space<vmem>>, %arg5: memref<1x128xf32, #tpu.memory_space<vmem>>, %arg6: memref<1x128xf32, #tpu.memory_space<vmem>>) attributes {dimension_semantics = [#tpu.dimension_semantics<arbitrary>], iteration_bounds = array<i64: 1>, scalar_prefetch = 1 : i64, scratch_operands = 2 : i64, tpu.core_type = #tpu.core_type<tc>, window_params = [{transform_indices = @transform_0, window_bounds = array<i64: 32, 128>}, {transform_indices = @transform_1, window_bounds = array<i64: 32, 128>}, {pipeline_mode = #tpu.pipeline_mode<synchronous>, transform_indices = @transform_2, window_bounds = array<i64: 1, 1>}]} {
    %c0_i32 = arith.constant 0 : i32
    %0 = arith.cmpi eq, %arg0, %c0_i32 : i32
    %1 = arith.extui %0 : i1 to i32
    %c0_i32_0 = arith.constant 0 : i32
    %2 = arith.cmpi ne, %1, %c0_i32_0 : i32
    scf.if %2 {
      %cst_18 = arith.constant 0.000000e+00 : f32
      %56 = vector.broadcast %cst_18 : f32 to vector<1x128xf32>
      %c0_19 = arith.constant 0 : index
      %c0_20 = arith.constant 0 : index
      %57 = vector.load %arg5[%c0_19, %c0_20] : memref<1x128xf32, #tpu.memory_space<vmem>>, vector<1x128xf32>
      tpu.vector_store %arg5[%c0_19, %c0_20], %56 {strides = array<i32>} : memref<1x128xf32, #tpu.memory_space<vmem>>, vector<1x128xf32>,
      %cst_21 = arith.constant 0.000000e+00 : f32
      %58 = vector.broadcast %cst_21 : f32 to vector<1x128xf32>
      %c0_22 = arith.constant 0 : index
      %c0_23 = arith.constant 0 : index
      %59 = vector.load %arg6[%c0_22, %c0_23] : memref<1x128xf32, #tpu.memory_space<vmem>>, vector<1x128xf32>
      tpu.vector_store %arg6[%c0_22, %c0_23], %58 {strides = array<i32>} : memref<1x128xf32, #tpu.memory_space<vmem>>, vector<1x128xf32>,
    } else {
    }
    %c0 = arith.constant 0 : index
    %3 = memref.load %arg1[%c0] : memref<2xi32, #tpu.memory_space<smem>>
    %c1 = arith.constant 1 : index
    %4 = memref.load %arg1[%c1] : memref<2xi32, #tpu.memory_space<smem>>
    %c32_i32 = arith.constant 32 : i32
    %5 = arith.muli %arg0, %c32_i32 : i32
    %6 = tpu.iota {dimensions = array<i32: 0>} : vector<32x128xi32>
    %7 = tpu.iota {dimensions = array<i32: 1>} : vector<32x128xi32>
    %8 = vector.broadcast %5 : i32 to vector<32x128xi32>
    %9 = arith.addi %8, %6 : vector<32x128xi32>
    %c128_i32 = arith.constant 128 : i32
    %10 = vector.broadcast %c128_i32 : i32 to vector<32x128xi32>
    %11 = arith.muli %9, %10 : vector<32x128xi32>
    %12 = arith.addi %11, %7 : vector<32x128xi32>
    %13 = vector.broadcast %3 : i32 to vector<32x128xi32>
    %14 = arith.cmpi slt, %12, %13 : vector<32x128xi32>
    %c-1640531527_i32 = arith.constant -1640531527 : i32
    %15 = arith.muli %4, %c-1640531527_i32 : i32
    %16 = vector.broadcast %15 : i32 to vector<32x128xi32>
    %17 = arith.xori %12, %16 : vector<32x128xi32>
    %c16_i32 = arith.constant 16 : i32
    %18 = vector.broadcast %c16_i32 : i32 to vector<32x128xi32>
    %19 = arith.shrui %17, %18 : vector<32x128xi32>
    %20 = arith.xori %17, %19 : vector<32x128xi32>
    %c2146121005_i32 = arith.constant 2146121005 : i32
    %21 = vector.broadcast %c2146121005_i32 : i32 to vector<32x128xi32>
    %22 = arith.muli %20, %21 : vector<32x128xi32>
    %c15_i32 = arith.constant 15 : i32
    %23 = vector.broadcast %c15_i32 : i32 to vector<32x128xi32>
    %24 = arith.shrui %22, %23 : vector<32x128xi32>
    %25 = arith.xori %22, %24 : vector<32x128xi32>
    %c-2073254261_i32 = arith.constant -2073254261 : i32
    %26 = vector.broadcast %c-2073254261_i32 : i32 to vector<32x128xi32>
    %27 = arith.muli %25, %26 : vector<32x128xi32>
    %c16_i32_1 = arith.constant 16 : i32
    %28 = vector.broadcast %c16_i32_1 : i32 to vector<32x128xi32>
    %29 = arith.shrui %27, %28 : vector<32x128xi32>
    %30 = arith.xori %27, %29 : vector<32x128xi32>
    %c429496730_i32 = arith.constant 429496730 : i32
    %31 = vector.broadcast %c429496730_i32 : i32 to vector<32x128xi32>
    %32 = arith.cmpi ult, %30, %31 : vector<32x128xi32>
    %33 = arith.andi %32, %14 : vector<32x128xi1>
    %c0_2 = arith.constant 0 : index
    %c0_3 = arith.constant 0 : index
    %34 = vector.load %arg3[%c0_2, %c0_3] : memref<32x128xi8, #tpu.memory_space<vmem>>, vector<32x128xi8>
    %c0_i8 = arith.constant 0 : i8
    %35 = vector.broadcast %c0_i8 : i8 to vector<32x128xi8>
    %36 = arith.cmpi ne, %34, %35 : vector<32x128xi8>
    %37 = arith.andi %33, %36 : vector<32x128xi1>
    %c0_4 = arith.constant 0 : index
    %c0_5 = arith.constant 0 : index
    %38 = vector.load %arg2[%c0_4, %c0_5] : memref<32x128xf32, #tpu.memory_space<vmem>>, vector<32x128xf32>
    %cst = arith.constant 0.000000e+00 : f32
    %39 = vector.broadcast %cst : f32 to vector<32x128xf32>
    %40 = arith.select %37, %38, %39 : vector<32x128xi1>, vector<32x128xf32>
    %c0_6 = arith.constant 0 : index
    %c0_7 = arith.constant 0 : index
    %41 = vector.load %arg5[%c0_6, %c0_7] : memref<1x128xf32, #tpu.memory_space<vmem>>, vector<1x128xf32>
    %cst_8 = arith.constant dense<0.000000e+00> : vector<128xf32>
    %42 = vector.multi_reduction <add>, %40, %cst_8 [0] : vector<32x128xf32> to vector<128xf32>
    %43 = vector.shape_cast %42 : vector<128xf32> to vector<1x128xf32>
    %44 = arith.addf %41, %43 : vector<1x128xf32>
    %c0_9 = arith.constant 0 : index
    %c0_10 = arith.constant 0 : index
    %45 = vector.load %arg5[%c0_9, %c0_10] : memref<1x128xf32, #tpu.memory_space<vmem>>, vector<1x128xf32>
    tpu.vector_store %arg5[%c0_9, %c0_10], %44 {strides = array<i32>} : memref<1x128xf32, #tpu.memory_space<vmem>>, vector<1x128xf32>,
    %c0_11 = arith.constant 0 : index
    %c0_12 = arith.constant 0 : index
    %46 = vector.load %arg6[%c0_11, %c0_12] : memref<1x128xf32, #tpu.memory_space<vmem>>, vector<1x128xf32>
    %47 = arith.extui %37 : vector<32x128xi1> to vector<32x128xi32>
    %48 = arith.sitofp %47 : vector<32x128xi32> to vector<32x128xf32>
    %cst_13 = arith.constant dense<0.000000e+00> : vector<128xf32>
    %49 = vector.multi_reduction <add>, %48, %cst_13 [0] : vector<32x128xf32> to vector<128xf32>
    %50 = vector.shape_cast %49 : vector<128xf32> to vector<1x128xf32>
    %51 = arith.addf %46, %50 : vector<1x128xf32>
    %c0_14 = arith.constant 0 : index
    %c0_15 = arith.constant 0 : index
    %52 = vector.load %arg6[%c0_14, %c0_15] : memref<1x128xf32, #tpu.memory_space<vmem>>, vector<1x128xf32>
    tpu.vector_store %arg6[%c0_14, %c0_15], %51 {strides = array<i32>} : memref<1x128xf32, #tpu.memory_space<vmem>>, vector<1x128xf32>,
    %c0_i32_16 = arith.constant 0 : i32
    %53 = arith.cmpi eq, %arg0, %c0_i32_16 : i32
    %54 = arith.extui %53 : i1 to i32
    %c0_i32_17 = arith.constant 0 : i32
    %55 = arith.cmpi ne, %54, %c0_i32_17 : i32
    scf.if %55 {
      %c0_18 = arith.constant 0 : index
      %c0_19 = arith.constant 0 : index
      %56 = vector.load %arg5[%c0_18, %c0_19] : memref<1x128xf32, #tpu.memory_space<vmem>>, vector<1x128xf32>
      %cst_20 = arith.constant dense<0.000000e+00> : vector<1xf32>
      %57 = vector.multi_reduction <add>, %56, %cst_20 [1] : vector<1x128xf32> to vector<1xf32>
      %58 = vector.shape_cast %57 : vector<1xf32> to vector<1x1xf32>
      %c0_21 = arith.constant 0 : index
      %c0_22 = arith.constant 0 : index
      %59 = vector.load %arg6[%c0_21, %c0_22] : memref<1x128xf32, #tpu.memory_space<vmem>>, vector<1x128xf32>
      %cst_23 = arith.constant dense<0.000000e+00> : vector<1xf32>
      %60 = vector.multi_reduction <add>, %59, %cst_23 [1] : vector<1x128xf32> to vector<1xf32>
      %61 = vector.shape_cast %60 : vector<1xf32> to vector<1x1xf32>
      %62 = arith.divf %58, %61 : vector<1x1xf32>
      %cst_24 = arith.constant 1.000000e-01 : f32
      %63 = vector.broadcast %cst_24 : f32 to vector<1x1xf32>
      %64 = arith.mulf %62, %63 : vector<1x1xf32>
      %c0_25 = arith.constant 0 : index
      %c0_26 = arith.constant 0 : index
      %65 = vector.load %arg4[%c0_25, %c0_26] : memref<1x1xf32, #tpu.memory_space<vmem>>, vector<1x1xf32>
      tpu.vector_store %arg4[%c0_25, %c0_26], %64 {strides = array<i32>} : memref<1x1xf32, #tpu.memory_space<vmem>>, vector<1x1xf32>,
    } else {
    }
    return
  }
  func.func @transform_0(%arg0: i32, %arg1: memref<2xi32, #tpu.memory_space<smem>>) -> (i32, i32) {
    %c0_i32 = arith.constant 0 : i32
    %c0_i32_0 = arith.constant 0 : i32
    return %arg0, %c0_i32 : i32, i32
  }
  func.func @transform_1(%arg0: i32, %arg1: memref<2xi32, #tpu.memory_space<smem>>) -> (i32, i32) {
    %c0_i32 = arith.constant 0 : i32
    %c0_i32_0 = arith.constant 0 : i32
    return %arg0, %c0_i32 : i32, i32
  }
  func.func @transform_2(%arg0: i32, %arg1: memref<2xi32, #tpu.memory_space<smem>>) -> (i32, i32) {
    %c0_i32 = arith.constant 0 : i32
    %c0_i32_0 = arith.constant 0 : i32
    %c0_i32_1 = arith.constant 0 : i32
    return %c0_i32, %c0_i32_0 : i32, i32
  }
}

</mosaic_0001>

<bundles_post_ra>
// kernel: tpu_custom_call.1
= control target key start
LH: loop header
LB: loop body
LE: loop exit
PB: predicated region body
PF: predicated region fallthrough
CT: control target
= control target key end

     0   :  { %s418_s0 = inlined_call_operand.hbm [shape: s32[2], index: 0, kind: input, shape index: {}]   ;;  %s419_s1 = inlined_call_operand.hbm [shape: f32[16,128], index: 1, kind: input, shape index: {}]   ;;  %s420_s2 = inlined_call_operand.vmem [shape: s8[16,128], index: 2, kind: input, shape index: {}]   ;;  %s421_s3 = inlined_call_operand.hbm [shape: f32[1,1], index: 3, kind: output, shape index: {}]  }
   0x1   :  { %s223_s14 = scalar_lea.hbm %s418_s0, 16 }
   0x2   :  { %p224_p0 = scmp.ne.s32.totalorder %s418_s0, %s223_s14  ;;  %p227_p1 = scmp.lt.u32.totalorder %s223_s14, %s418_s0 }
   0x4   :  { %p229_p2 = pnand %p227_p1, %p224_p0 }
   0x6   :  { %232 = shalt.err (!%p229_p2)  }
   0x7   :  { %s283_s19 = smov [#allocation5]  }
   0x8   :  { %9 = dma.hbm_to_smem %s418_s0, 16, %s283_s19, [#allocation4] }
   0x9   :  { %277 = dma.done.wait [#allocation4], 16 }
   0xa   :  { %278 = vsyncadd [#allocation4], 4294967280 }
   0xb   :  { %11 = sfence }
   0xc   :  { %12 = vsyncpa [#allocation7], 0 }
   0xd   :  { %13 = vsyncpa [#allocation8], 0 }
   0xe   :  { %18 = vsyncadd [#allocation7], 256  ;;  %s284_s22 = smov [#allocation6]   ;;  %s233_s26 = scalar_lea.hbm %s419_s1, 256 }
   0xf   :  { %s19_s23 = sshll.u32 %s284_s22, 4  ;;  %p234_p3 = scmp.ne.s32.totalorder %s419_s1, %s233_s26  ;;  %s20_s23 = int_to_ptr.vmem [resolvable:$true] %s19_s23 }
  0x10   :  { %p237_p4 = scmp.lt.u32.totalorder %s233_s26, %s419_s1 }
  0x12   :  { %p239_p5 = pnand %p237_p4, %p234_p3 }
  0x14   :  { %242 = shalt.err (!%p239_p5)
}
  0x15   :  { %s243_s0 = scalar_lea.vmem %s20_s23, 256  ;;  %s247_s4 = scalar_lea.vmem %s20_s23, 512 }
  0x16   :  { %p244_p6 = scmp.ne.s32.totalorder %s20_s23, %s243_s0  ;;  %p248_p7 = scmp.lt.s32.totalorder %s20_s23, %s20_s23 }
  0x17   :  { %p249_p8 = scmp.lt.s32.totalorder %s247_s4, %s243_s0 }
  0x19   :  { %p250_p9 = por %p249_p8, %p248_p7 }
  0x1b   :  { %p251_p10 = pnand %p250_p9, %p244_p6 }
  0x1d   :  { %254 = shalt.err (!%p251_p10)
}
  0x1e   :  { %s285_s5 = smov 128   ;;  %s286_s6 = smov 8  }
  0x1f   :  { %25 = dma.hbm_to_vmem [thread:$0]  %s419_s1, 256, %s20_s23, [#allocation7], %s285_s5, %s285_s5, %s286_s6  }
  0x20   :  { %279 = dma.done.wait [#allocation7], 512  }
  0x21   :  { %280 = vsyncadd [#allocation7], 4294966784  ;;  %v42_v0 = vlaneseq  ;;  %v287_v1 = vmov 0.0   ;;  %s209_s9 = sld [smem:[#allocation5 + $0x1]]  ;;  %s39_s10 = sld [smem:[#allocation5]]  ;;  %v288_v49 = vmov 0  }
  0x22   :  { %38 = vst [vmem:[#allocation3] sm:$0x1] %v287_v1  ;;  %37 = vst [vmem:[#allocation2] sm:$0x1] %v287_v1  ;;  %v113_v32 = vld [vmem:[%s420_s2] sm:$0x3] }
  0x23   :  { %v43_v2 = vshrl.u32 %v42_v0, 7  ;;  %v48_v3 = vand.u32 127, %v42_v0  ;;  %v114_v35 = vld [vmem:[%s420_s2 + $0x2] sm:$0x3]  ;;  %v115_v38 = vld [vmem:[%s420_s2 + $0x4] sm:$0x3]  ;;  %vm117_vm0 = vnez %v113_v32 }
  0x24   :  { %v116_v41 = vld [vmem:[%s420_s2 + $0x6] sm:$0x3]  ;;  %vm118_vm1 = vnez %v114_v35  ;;  %vm119_vm2 = vnez %v115_v38  ;;  %v121_v50 = vsel %vm117_vm0, 16843009, %v288_v49  ;;  %s289_s2 = smov [#allocation9]  }
  0x25   :  { %v44_v4 = vadd.s32 8, %v43_v2  ;;  %v45_v5 = vadd.s32 16, %v43_v2  ;;  %v46_v6 = vadd.s32 24, %v43_v2  ;;  %v54_v7 = vmul.u32 128, %v43_v2  ;;  %s200_s19 = sshll.u32 %s289_s2, 4  ;;  %s201_s19 = int_to_ptr.vmem [resolvable:$true] %s200_s19 }
  0x26   :  { %vm120_vm3 = vnez %v116_v41  ;;  %v122_v53 = vsel %vm118_vm1, 16843009, %v288_v49  ;;  %v123_v56 = vsel %vm119_vm2, 16843009, %v288_v49  ;;  %v125_v60 = vunpack.c.0.s8 %v121_v50  ;;  %s255_s20 = scalar_lea.vmem %s201_s19, 16  ;;  %s259_s21 = scalar_lea.vmem %s201_s19, 32 }
  0x27   :  { %v55_v8 = vmul.u32 128, %v44_v4  ;;  %v56_v9 = vmul.u32 128, %v45_v5  ;;  %v336_v10 = vadd.s32 %v54_v7, %v48_v3  ;;  %s67_s1 = smul.u32 2654435769, %s209_s9  ;;  %v62_v44 = vstv %s39_s10  ;;  %p256_p11 = scmp.ne.s32.totalorder %s201_s19, %s255_s20 }
  0x28   :  { %v57_v11 = vmul.u32 128, %v46_v6  ;;  %v124_v59 = vsel %vm120_vm3, 16843009, %v288_v49  ;;  %v126_v63 = vunpack.c.0.s8 %v122_v53  ;;  %v127_v0 = vunpack.c.0.s8 %v123_v56  ;;  %v137_v6 = vld [vmem:[#allocation6] sm:$0xff]  ;;  %p260_p12 = scmp.lt.s32.totalorder %s201_s19, %s201_s19  ;;  %p261_p13 = scmp.lt.s32.totalorder %s259_s21, %s255_s20 }
  0x29   :  { %v338_v12 = vadd.s32 %v55_v8, %v48_v3  ;;  %v340_v13 = vadd.s32 %v56_v9, %v48_v3  ;;  %v68_v15 = vstv %s67_s1  ;;  %vm63_vm4 = vcmp.lt.s32.totalorder %v336_v10, %v62_v44  ;;  %v138_v9 = vld [vmem:[#allocation6 + $0x8] sm:$0xff]  ;;  %v145_v38 = vld [vmem:[#allocation2] sm:$0x1] }
  0x2a   :  { %v342_v14 = vadd.s32 %v57_v11, %v48_v3  ;;  %v69_v16 = vxor.u32 %v68_v15, %v336_v10  ;;  %v128_v3 = vunpack.c.0.s8 %v124_v59  ;;  %vm129_vm14 = vcmp.ne.s32.totalorder %v125_v60, 0  ;;  %v139_v11 = vld [vmem:[#allocation6 + $0x10] sm:$0xff]  ;;  %p262_p0 = por %p261_p13, %p260_p12 }
  0x2b   :  { %v70_v17 = vxor.u32 %v68_v15, %v338_v12  ;;  %v71_v18 = vxor.u32 %v68_v15, %v340_v13  ;;  %vm64_vm5 = vcmp.lt.s32.totalorder %v338_v12, %v62_v44  ;;  %vm65_vm6 = vcmp.lt.s32.totalorder %v340_v13, %v62_v44  ;;  %v140_v13 = vld [vmem:[#allocation6 + $0x18] sm:$0xff] }
  0x2c   :  { %v72_v19 = vxor.u32 %v68_v15, %v342_v14  ;;  %v73_v20 = vshrl.u32 %v69_v16, 16  ;;  %vm66_vm9 = vcmp.lt.s32.totalorder %v342_v14, %v62_v44  ;;  %vm130_vm0 = vcmp.ne.s32.totalorder %v126_v63, 0  ;;  %p263_p1 = pnand %p262_p0, %p256_p11 }
  0x2d   :  { %v74_v21 = vshrl.u32 %v70_v17, 16  ;;  %v75_v22 = vshrl.u32 %v71_v18, 16  ;;  %vm382_vm2 = vcmp.ne.s32.totalorder %v127_v0, 0  ;;  %vm386_vm3 = vcmp.ne.s32.totalorder %v128_v3, 0 }
  0x2e   :  { %v76_v23 = vshrl.u32 %v72_v19, 16  ;;  %v77_v24 = vxor.u32 %v73_v20, %v69_v16 }
  0x2f   :  { %v78_v25 = vxor.u32 %v74_v21, %v70_v17  ;;  %v79_v26 = vxor.u32 %v75_v22, %v71_v18 }
  0x30   :  { %v80_v27 = vxor.u32 %v76_v23, %v72_v19  ;;  %v81_v28 = vmul.u32 2146121005, %v77_v24 }
  0x31   :  { %v82_v29 = vmul.u32 2146121005, %v78_v25  ;;  %v83_v30 = vmul.u32 2146121005, %v79_v26 }
  0x32   :  { %v84_v31 = vmul.u32 2146121005, %v80_v27  ;;  %v85_v33 = vshrl.u32 %v81_v28, 15 }
  0x33   :  { %v86_v34 = vshrl.u32 %v82_v29, 15  ;;  %v87_v36 = vshrl.u32 %v83_v30, 15 }
  0x34   :  { %v88_v37 = vshrl.u32 %v84_v31, 15  ;;  %v89_v39 = vxor.u32 %v85_v33, %v81_v28 }
  0x35   :  { %v90_v40 = vxor.u32 %v86_v34, %v82_v29  ;;  %v91_v42 = vxor.u32 %v87_v36, %v83_v30 }
  0x36   :  { %v92_v43 = vxor.u32 %v88_v37, %v84_v31  ;;  %v93_v45 = vmul.u32 2221713035, %v89_v39  ;;  %v157_v37 = vld [vmem:[#allocation3] sm:$0x1] }
  0x37   :  { %v94_v46 = vmul.u32 2221713035, %v90_v40  ;;  %v95_v47 = vmul.u32 2221713035, %v91_v42 }
  0x38   :  { %v96_v48 = vmul.u32 2221713035, %v92_v43  ;;  %v97_v51 = vshrl.u32 %v93_v45, 16 }
  0x39   :  { %v98_v52 = vshrl.u32 %v94_v46, 16  ;;  %v99_v54 = vshrl.u32 %v95_v47, 16 }
  0x3a   :  { %v100_v55 = vshrl.u32 %v96_v48, 16  ;;  %v101_v57 = vxor.u32 %v97_v51, %v93_v45 }
  0x3b   :  { %v102_v58 = vxor.u32 %v98_v52, %v94_v46  ;;  %v103_v61 = vxor.u32 %v99_v54, %v95_v47 }
  0x3c   :  { %v104_v62 = vxor.u32 %v100_v55, %v96_v48  ;;  %vm105_vm7 = vcmp.lt.u32.totalorder %v101_v57, 429496730 }
  0x3d   :  { %vm106_vm8 = vcmp.lt.u32.totalorder %v102_v58, 429496730  ;;  %vm107_vm10 = vcmp.lt.u32.totalorder %v103_v61, 429496730  ;;  %vm366_vm12 = vmand %vm105_vm7, %vm63_vm4 }
  0x3e   :  { %vm108_vm11 = vcmp.lt.u32.totalorder %v104_v62, 429496730  ;;  %vm370_vm13 = vmand %vm106_vm8, %vm64_vm5  ;;  %vm181_vm8 = vcmask 1040384  }
  0x3f   :  { %vm374_vm15 = vmand %vm107_vm10, %vm65_vm6 }
  0x40   :  { %vm378_vm1 = vmand %vm108_vm11, %vm66_vm9  ;;  %vm192_vm9 = vcmask 0  }
  0x41   :  { %vm133_vm4 = vmand %vm366_vm12, %vm129_vm14 }
  0x42   :  { %vm134_vm5 = vmand %vm370_vm13, %vm130_vm0  ;;  %v210_v12 = vsel %vm133_vm4, 1.0, %v287_v1  ;;  %v141_v14 = vsel %vm133_vm4, %v137_v6, 0.0 }
  0x43   :  { %vm135_vm6 = vmand %vm374_vm15, %vm382_vm2  ;;  %v211_v15 = vsel %vm134_vm5, 1.0, %v287_v1  ;;  %v142_v16 = vsel %vm134_vm5, %v138_v9, 0.0 }
  0x44   :  { %vm136_vm7 = vmand %vm378_vm1, %vm386_vm3  ;;  %v212_v17 = vsel %vm135_vm6, 1.0, %v287_v1  ;;  %v166_v18 = vadd.f32 %v211_v15, %v210_v12  ;;  %v143_v19 = vsel %vm135_vm6, %v139_v11, 0.0  ;;  %v146_v20 = vadd.f32 %v142_v16, %v141_v14 }
  0x45   :  { %v213_v21 = vsel %vm136_vm7, 1.0, %v287_v1  ;;  %v144_v22 = vsel %vm136_vm7, %v140_v13, 0.0 }
  0x46   :  { %v167_v23 = vadd.f32 %v212_v17, %v166_v18  ;;  %v147_v24 = vadd.f32 %v146_v20, %v143_v19 }
  0x48   :  { %v168_v25 = vadd.f32 %v213_v21, %v167_v23  ;;  %v148_v26 = vadd.f32 %v147_v24, %v144_v22 }
  0x4a   :  { %v169_v27 = vrot.slane %v168_v25, 4  ;;  %v149_v28 = vrot.slane %v148_v26, 4 }
  0x4c   :  { %v170_v29 = vadd.f32 %v169_v27, %v168_v25  ;;  %v150_v30 = vadd.f32 %v149_v28, %v148_v26 }
  0x4e   :  { %v171_v31 = vrot.slane %v170_v29, 2  ;;  %v151_v32 = vrot.slane %v150_v30, 2 }
  0x50   :  { %v172_v33 = vadd.f32 %v171_v31, %v170_v29  ;;  %v152_v34 = vadd.f32 %v151_v32, %v150_v30 }
  0x52   :  { %v173_v35 = vrot.slane %v172_v33, 1  ;;  %v153_v36 = vrot.slane %v152_v34, 1 }
  0x54   :  { %v174_v39 = vadd.f32 %v173_v35, %v172_v33  ;;  %v154_v40 = vadd.f32 %v153_v36, %v152_v34 }
  0x56   :  { %v175_v1 = vadd.f32 %v174_v39, %v157_v37  ;;  %v155_v41 = vadd.f32 %v154_v40, %v145_v38 }
  0x58   :  { %176 = vst [vmem:[#allocation3] sm:$0x1] %v175_v1  ;;  %156 = vst [vmem:[#allocation2] sm:$0x1] %v155_v41 }
  0x5f   :  { %v185_v42 = vld [vmem:[#allocation3] sm:$0x1]  ;;  %v180_v43 = vld [vmem:[#allocation2] sm:$0x1] }
  0x60   :  { %v186_v44 = vsel %vm181_vm8, %v185_v42, 0.0  ;;  %v182_v45 = vsel %vm181_vm8, %v180_v43, 0.0 }
  0x61   :  { %187 = vadd.xlane.f32.xlu0 %v186_v44 }
  0x65   :  { %183 = vadd.xlane.f32.xlu0 %v182_v45 }
  0xee   :  { %v188_v46 = vpop.xlane.xlu0 %187 }
  0xef   :  { %221 = vrcp.f32 %v188_v46 }
  0xf2   :  { %v184_v47 = vpop.xlane.xlu0 %183 }
  0xf9   :  { %v222_v48 = vpop.eup %221 }
  0xfa   :  { %v190_v49 = vmul.f32 %v222_v48, %v184_v47 }
  0xfc   :  { %v191_v50 = vmul.f32 0.1, %v190_v49 }
  0xfe   :  { %193 = vst.msk [vmem:[#allocation9] sm:$0x1] %vm192_vm9, %v191_v50 }
  0xff   :  { %266 = shalt.err (!%p263_p1)
}
 0x100   :  { %s267_s24 = scalar_lea.hbm %s421_s3, 16 }
 0x101   :  { %p268_p2 = scmp.ne.s32.totalorder %s421_s3, %s267_s24  ;;  %p271_p3 = scmp.lt.u32.totalorder %s267_s24, %s421_s3 }
 0x103   :  { %p273_p4 = pnand %p271_p3, %p268_p2 }
 0x105   :  { %276 = shalt.err (!%p273_p4)
}
 0x106   :  { %203 = dma.vmem_to_hbm [thread:$0]  %s201_s19, 16, %s421_s3, [#allocation8]  }
 0x107   :  { %281 = dma.done.wait [#allocation8], 16  }
 0x108   :  { %282 = vsyncadd [#allocation8], 4294967280 }
 0x109   :  { %207 = vsyncpa [#allocation7], 1 }
 0x10a   :  { %208 = vsyncpa [#allocation8], 1 }

</bundles_post_ra>
